<compile_context>
chip_gen: v7x
topology: tpu7x:2x2x1
jax: 0.10.0
libtpu: 0.0.40
codegen_flags: <defaults>
</compile_context>

<pallas_src>
import jax
import jax.numpy as jnp
from jax.experimental import pallas as pl
from jax.experimental.pallas import tpu as pltpu

EPS = 1e-5


def _round_up(a, m):
    return (a + m - 1) // m * m


def _pick_tm(R, cap):
    """Row tile: multiple of 16 (bf16 sublane), multiple of 256 when large so
    v6e/v7x 256-wide MXU passes are full, and small enough that there are at
    least 2 row tiles (keeps both v7x TensorCores busy)."""
    tm = min(cap, _round_up(R, 16))
    tm = _round_up(tm, 16)
    if tm >= 256:
        tm = _round_up(tm, 256)
    if R >= 256 and pl.cdiv(R, tm) < 2:
        tm = max(128, _round_up(pl.cdiv(R, 2), 16))
    return tm


def _pick_tn(D, target):
    """Divisor of D (multiple of 128 lanes) closest to `target`."""
    units = D // 128
    best = 128
    for u in range(1, units + 1):
        if units % u == 0:
            tn = u * 128
            if abs(tn - target) < abs(best - target):
                best = tn
    return best


def _prenorm_residual_kernel_resident(x_ref, w_ref, b_ref, o_ref):
    """nc == 1: whole fused W' resident in VMEM; one grid step per row tile."""
    x = x_ref[...].astype(jnp.float32)
    # One-pass LayerNorm stats: var = E[x^2] - mu^2 (single VPU sweep).
    mu = jnp.mean(x, axis=-1, keepdims=True)
    ex2 = jnp.mean(x * x, axis=-1, keepdims=True)
    var = ex2 - mu * mu
    xn = ((x - mu) * jax.lax.rsqrt(var + EPS)).astype(w_ref.dtype)
    # sublayer: Linear on the MXU, f32 accumulation (affine folded into W'/b').
    z = jnp.dot(xn, w_ref[...], preferred_element_type=jnp.float32) + b_ref[...]
    # dropout p = 0.0 -> identity.
    # TODO(synk): for p > 0, pltpu.prng_seed(seed ^ program_id) +
    # pltpu.prng_random_bits -> keep-mask, scale by 1/(1-p) (inverted dropout).
    o_ref[...] = (x + z).astype(o_ref.dtype)


def _prenorm_residual_kernel_tiled(x_ref, w_ref, b_ref, o_ref, xn_ref):
    """nc > 1: W' column-tiled; normalized rows cached in VMEM across j."""
    j = pl.program_id(1)
    tn = o_ref.shape[-1]

    @pl.when(j == 0)
    def _():
        x = x_ref[...].astype(jnp.float32)
        mu = jnp.mean(x, axis=-1, keepdims=True)
        ex2 = jnp.mean(x * x, axis=-1, keepdims=True)
        var = ex2 - mu * mu
        xn_ref[...] = ((x - mu) * jax.lax.rsqrt(var + EPS)).astype(xn_ref.dtype)

    z = jnp.dot(xn_ref[...], w_ref[...], preferred_element_type=jnp.float32)
    z = z + b_ref[...]
    # Residual add against the matching columns of the (full-width) x tile.
    col0 = pl.multiple_of(j * tn, 128)
    x_cols = x_ref[:, pl.ds(col0, tn)].astype(jnp.float32)
    o_ref[...] = (x_cols + z).astype(o_ref.dtype)


def prenorm_residual(x, gamma, beta, w, b, *, row_tile=None, col_tile=512,
                     mxu_dtype=jnp.bfloat16):
    """out + Linear(LayerNorm(out)), dropout p=0 (identity), fused on TPU.

    x: (B, S, D); gamma/beta: (D,); w: (D, D); b: (D,)
    """
    B, S, D = x.shape
    assert D % 128 == 0, "feature dim must be lane-aligned (multiple of 128)"
    R = B * S
    x2 = x.reshape(R, D)

    # Fold the LayerNorm affine into the linear layer (once, outside the kernel):
    #   (xn*gamma + beta) @ W + b  ==  xn @ (gamma[:,None]*W) + (beta @ W + b)
    w_f32 = w.astype(jnp.float32)
    w_fused = (gamma.astype(jnp.float32)[:, None] * w_f32).astype(mxu_dtype)
    b_fused = (beta.astype(jnp.float32) @ w_f32
               + b.astype(jnp.float32)).reshape(1, D).astype(jnp.float32)

    itemsize = jnp.dtype(x.dtype).itemsize
    mxu_itemsize = jnp.dtype(mxu_dtype).itemsize

    # Generation-aware VMEM budget (v5e/v6e: 128 MiB, v7x: 64 MiB physical).
    try:
        vmem_cap = int(getattr(pltpu.get_tpu_info(), "vmem_capacity_bytes",
                               64 * 1024 * 1024))
    except Exception:
        vmem_cap = 64 * 1024 * 1024  # conservative fallback
    vmem_budget = (vmem_cap * 3) // 4  # leave headroom for compiler scratch

    # ---------------- tiling ----------------
    tm = _pick_tm(R, row_tile or 512)

    def resident_cost(tm_):
        return (D * D * mxu_itemsize + D * 4        # W', b' (single-buffered)
                + 2 * tm_ * D * itemsize            # x tile, double-buffered
                + 2 * tm_ * D * itemsize)           # out tile, double-buffered

    if resident_cost(tm) <= vmem_budget:
        tn, nc = D, 1
        est = resident_cost(tm)
    else:
        # Column-tiled: W' is re-streamed once per row tile -> tall row tile
        # (above the W-stream HBM knee) and single-buffered x block.
        big_vmem = vmem_cap >= 96 * 1024 * 1024
        tm = _pick_tm(R, row_tile or (1024 if big_vmem else 512))
        tn = _pick_tn(D, col_tile)
        if tn == D and D > 128:  # degenerate divisor set: force a real split
            tn = _pick_tn(D, D // 2)

        def tiled_cost(tm_, tn_):
            return (tm_ * D * itemsize              # x tile, single-buffered
                    + tm_ * D * mxu_itemsize        # xn VMEM scratch
                    + 2 * D * tn_ * mxu_itemsize    # W' tile, double-buffered
                    + 2 * tm_ * tn_ * itemsize      # out tile, double-buffered
                    + 2 * tn_ * 4)                  # b' tile, double-buffered

        while tn > 128 and tiled_cost(128, tn) > vmem_budget:
            tn = _pick_tn(D, tn // 2)
        while tm > 128 and tiled_cost(tm, tn) > vmem_budget:
            tm = max(128, tm - 128)
        nc = D // tn
        est = tiled_cost(tm, tn)

    # Partial last row block (no pad / slice): OOB reads stay row-local under
    # per-row LayerNorm, OOB writes are masked by Pallas.
    nr = pl.cdiv(R, tm)

    if nc == 1:
        kernel = _prenorm_residual_kernel_resident
        in_specs = [
            pl.BlockSpec((tm, D), lambda i, j: (i, 0)),
            # Block index never changes -> single-buffer (halves VMEM footprint).
            pl.BlockSpec((D, D), lambda i, j: (0, 0), pipeline_mode=pl.Buffered(1)),
            pl.BlockSpec((1, D), lambda i, j: (0, 0), pipeline_mode=pl.Buffered(1)),
        ]
        scratch = []
    else:
        kernel = _prenorm_residual_kernel_tiled
        in_specs = [
            # x block only changes once every nc steps -> single-buffer it and
            # spend the saved VMEM on a taller row tile.
            pl.BlockSpec((tm, D), lambda i, j: (i, 0), pipeline_mode=pl.Buffered(1)),
            pl.BlockSpec((D, tn), lambda i, j: (0, j)),
            pl.BlockSpec((1, tn), lambda i, j: (0, j)),
        ]
        scratch = [pltpu.VMEM((tm, D), mxu_dtype)]

    vmem_limit = min(vmem_budget, max(32 * 1024 * 1024, 2 * est))

    # W' is read once when resident, once per row tile when column-tiled.
    w_passes = 1 if nc == 1 else nr
    cost = pl.CostEstimate(
        flops=2 * R * D * D + 10 * R * D,
        transcendentals=R,  # one rsqrt per row
        bytes_accessed=(2 * R * D * itemsize
                        + w_passes * D * D * mxu_itemsize + 4 * D),
    )

    out = pl.pallas_call(
        kernel,
        out_shape=jax.ShapeDtypeStruct((R, D), x.dtype),
        grid_spec=pltpu.PrefetchScalarGridSpec(
            num_scalar_prefetch=0,
            grid=(nr, nc),
            in_specs=in_specs,
            out_specs=pl.BlockSpec((tm, tn), lambda i, j: (i, j)),
            scratch_shapes=scratch,
        ),
        compiler_params=pltpu.CompilerParams(
            dimension_semantics=("parallel", "arbitrary"),
            vmem_limit_bytes=vmem_limit,
        ),
        cost_estimate=cost,
    )(x2, w_fused, b_fused)

    return out.reshape(B, S, D)


def reference(x, gamma, beta, w, b):
    xf = x.astype(jnp.float32)
    mu = jnp.mean(xf, axis=-1, keepdims=True)
    var = jnp.mean((xf - mu) ** 2, axis=-1, keepdims=True)
    xn = (xf - mu) * jax.lax.rsqrt(var + EPS)
    y = xn * gamma + beta
    z = y @ w.astype(jnp.float32) + b
    return (xf + z).astype(x.dtype)


if __name__ == "__main__":
    B, S, D = 2, 8, 128  # small shapes; D lane-aligned (multiple of 128)

    key = jax.random.PRNGKey(0)
    kx, kw, kb, kg, kbe = jax.random.split(key, 5)

    x = jax.random.normal(kx, (B, S, D), dtype=jnp.float32)
    # Non-trivial LayerNorm affine so the gamma/beta -> W'/b' fold is exercised.
    gamma = 1.0 + 0.1 * jax.random.normal(kg, (D,), dtype=jnp.float32)
    beta = 0.05 * jax.random.normal(kbe, (D,), dtype=jnp.float32)
    w = jax.random.normal(kw, (D, D), dtype=jnp.float32) * (1.0 / jnp.sqrt(D))
    b = jax.random.normal(kb, (D,), dtype=jnp.float32) * 0.01

    out = prenorm_residual(x, gamma, beta, w, b)
    out = jax.block_until_ready(out)

    ref = reference(x, gamma, beta, w, b)
    assert out.shape == (B, S, D)
    # bf16 MXU operands with f32 accumulation -> slightly looser tolerance.
    assert jnp.allclose(out, ref, atol=3e-2, rtol=3e-2), "mismatch vs reference"

    print("KERNEL_OK")
</pallas_src>

<mosaic_0001>
module attributes {stable_mosaic.version = 11 : i64} {
  func.func @_prenorm_residual_kernel_resident(%arg0: i32, %arg1: i32, %arg2: memref<16x128xf32, #tpu.memory_space<vmem>>, %arg3: memref<128x128xbf16, #tpu.memory_space<vmem>>, %arg4: memref<1x128xf32, #tpu.memory_space<vmem>>, %arg5: memref<16x128xf32, #tpu.memory_space<vmem>>) attributes {dimension_semantics = [#tpu.dimension_semantics<parallel>, #tpu.dimension_semantics<arbitrary>], iteration_bounds = array<i64: 1, 1>, scalar_prefetch = 0 : i64, scratch_operands = 0 : i64, tpu.core_type = #tpu.core_type<tc>, window_params = [{transform_indices = @transform_0, window_bounds = array<i64: 16, 128>}, {pipeline_mode = #tpu.pipeline_mode<synchronous>, transform_indices = @transform_1, window_bounds = array<i64: 128, 128>}, {pipeline_mode = #tpu.pipeline_mode<synchronous>, transform_indices = @transform_2, window_bounds = array<i64: 1, 128>}, {transform_indices = @transform_3, window_bounds = array<i64: 16, 128>}]} {
    %c0 = arith.constant 0 : index
    %c0_0 = arith.constant 0 : index
    %0 = vector.load %arg2[%c0, %c0_0] : memref<16x128xf32, #tpu.memory_space<vmem>>, vector<16x128xf32>
    %cst = arith.constant dense<0.000000e+00> : vector<16xf32>
    %1 = vector.multi_reduction <add>, %0, %cst [1] : vector<16x128xf32> to vector<16xf32>
    %2 = vector.shape_cast %1 : vector<16xf32> to vector<16x1xf32>
    %cst_1 = arith.constant 1.280000e+02 : f32
    %3 = vector.broadcast %cst_1 : f32 to vector<16x1xf32>
    %4 = arith.divf %2, %3 : vector<16x1xf32>
    %5 = arith.mulf %0, %0 : vector<16x128xf32>
    %cst_2 = arith.constant dense<0.000000e+00> : vector<16xf32>
    %6 = vector.multi_reduction <add>, %5, %cst_2 [1] : vector<16x128xf32> to vector<16xf32>
    %7 = vector.shape_cast %6 : vector<16xf32> to vector<16x1xf32>
    %cst_3 = arith.constant 1.280000e+02 : f32
    %8 = vector.broadcast %cst_3 : f32 to vector<16x1xf32>
    %9 = arith.divf %7, %8 : vector<16x1xf32>
    %10 = arith.mulf %4, %4 : vector<16x1xf32>
    %11 = arith.subf %9, %10 : vector<16x1xf32>
    %12 = vector.broadcast %4 : vector<16x1xf32> to vector<16x128xf32>
    %13 = arith.subf %0, %12 : vector<16x128xf32>
    %cst_4 = arith.constant 9.99999974E-6 : f32
    %14 = vector.broadcast %cst_4 : f32 to vector<16x1xf32>
    %15 = arith.addf %11, %14 : vector<16x1xf32>
    %16 = math.rsqrt %15 : vector<16x1xf32>
    %17 = vector.broadcast %16 : vector<16x1xf32> to vector<16x128xf32>
    %18 = arith.mulf %13, %17 : vector<16x128xf32>
    %19 = arith.truncf %18 : vector<16x128xf32> to vector<16x128xbf16>
    %c0_5 = arith.constant 0 : index
    %c0_6 = arith.constant 0 : index
    %20 = vector.load %arg3[%c0_5, %c0_6] : memref<128x128xbf16, #tpu.memory_space<vmem>>, vector<128x128xbf16>
    %cst_7 = arith.constant dense<0.000000e+00> : vector<16x128xf32>
    %21 = tpu.matmul %19, %20, %cst_7 {dimension_numbers = #tpu.dot_dimension_numbers<[1], [0], [0], [1], [0, 0, 1, 1], [], []>} : vector<16x128xbf16>, vector<128x128xbf16>, vector<16x128xf32> -> vector<16x128xf32>
    %c0_8 = arith.constant 0 : index
    %c0_9 = arith.constant 0 : index
    %22 = vector.load %arg4[%c0_8, %c0_9] : memref<1x128xf32, #tpu.memory_space<vmem>>, vector<1x128xf32>
    %23 = vector.broadcast %22 : vector<1x128xf32> to vector<16x128xf32>
    %24 = arith.addf %21, %23 : vector<16x128xf32>
    %25 = arith.addf %0, %24 : vector<16x128xf32>
    %c0_10 = arith.constant 0 : index
    %c0_11 = arith.constant 0 : index
    %26 = vector.load %arg5[%c0_10, %c0_11] : memref<16x128xf32, #tpu.memory_space<vmem>>, vector<16x128xf32>
    tpu.vector_store %arg5[%c0_10, %c0_11], %25 {strides = array<i32>} : memref<16x128xf32, #tpu.memory_space<vmem>>, vector<16x128xf32>,
    return
  }
  func.func @transform_0(%arg0: i32, %arg1: i32) -> (i32, i32) {
    %c0_i32 = arith.constant 0 : i32
    %c0_i32_0 = arith.constant 0 : i32
    return %arg0, %c0_i32 : i32, i32
  }
  func.func @transform_1(%arg0: i32, %arg1: i32) -> (i32, i32) {
    %c0_i32 = arith.constant 0 : i32
    %c0_i32_0 = arith.constant 0 : i32
    %c0_i32_1 = arith.constant 0 : i32
    return %c0_i32, %c0_i32_0 : i32, i32
  }
  func.func @transform_2(%arg0: i32, %arg1: i32) -> (i32, i32) {
    %c0_i32 = arith.constant 0 : i32
    %c0_i32_0 = arith.constant 0 : i32
    %c0_i32_1 = arith.constant 0 : i32
    return %c0_i32, %c0_i32_0 : i32, i32
  }
  func.func @transform_3(%arg0: i32, %arg1: i32) -> (i32, i32) {
    %c0_i32 = arith.constant 0 : i32
    return %arg0, %arg1 : i32, i32
  }
}

</mosaic_0001>

<bundles_post_ra>
// kernel: tpu_custom_call.1
= control target key start
LH: loop header
LB: loop body
LE: loop exit
PB: predicated region body
PF: predicated region fallthrough
CT: control target
= control target key end

     0   :  { %8 = vsyncpa [#allocation3], 0  ;;  %s427_s0 = inlined_call_operand.hbm [shape: f32[16,128], index: 0, kind: input, shape index: {}]   ;;  %s428_s1 = inlined_call_operand.hbm [shape: bf16[128,128], index: 1, kind: input, shape index: {}]   ;;  %s429_s2 = inlined_call_operand.vmem [shape: f32[1,128], index: 2, kind: input, shape index: {}]   ;;  %s430_s3 = inlined_call_operand.hbm [shape: f32[16,128], index: 3, kind: output, shape index: {}]  }
   0x1   :  { %9 = vsyncpa [#allocation6], 0 }
   0x2   :  { %10 = vsyncpa [#allocation4], 0  ;;  %s339_s12 = smov [#allocation2]   ;;  %s267_s16 = scalar_lea.hbm %s427_s0, 256 }
   0x3   :  { %s16_s13 = sshll.u32 %s339_s12, 4  ;;  %p268_p0 = scmp.ne.s32.totalorder %s427_s0, %s267_s16  ;;  %s17_s13 = int_to_ptr.vmem [resolvable:$true] %s16_s13 }
   0x4   :  { %p271_p1 = scmp.lt.u32.totalorder %s267_s16, %s427_s0 }
   0x6   :  { %p273_p2 = pnand %p271_p1, %p268_p0 }
   0x8   :  { %276 = shalt.err (!%p273_p2)
}
   0x9   :  { %s277_s21 = scalar_lea.vmem %s17_s13, 256  ;;  %p282_p4 = scmp.lt.s32.totalorder %s17_s13, %s17_s13 }
   0xa   :  { %p278_p3 = scmp.ne.s32.totalorder %s17_s13, %s277_s21  ;;  %p283_p5 = scmp.lt.s32.totalorder %s277_s21, %s277_s21 }
   0xc   :  { %p284_p6 = por %p283_p5, %p282_p4 }
   0xe   :  { %p285_p7 = pnand %p284_p6, %p278_p3 }
  0x10   :  { %288 = shalt.err (!%p285_p7)
}
  0x11   :  { %s340_s22 = smov 128   ;;  %s341_s23 = smov 8  }
  0x12   :  { %22 = dma.hbm_to_vmem [thread:$0]  %s427_s0, 256, %s17_s13, [#allocation3], %s340_s22, %s340_s22, %s341_s23  }
  0x13   :  { %s342_s26 = smov [#allocation5]   ;;  %s289_s30 = scalar_lea.hbm %s428_s1, 1024 }
  0x14   :  { %s28_s27 = sshll.u32 %s342_s26, 4  ;;  %p290_p8 = scmp.ne.s32.totalorder %s428_s1, %s289_s30  ;;  %s29_s27 = int_to_ptr.vmem [resolvable:$true] %s28_s27 }
  0x15   :  { %p293_p9 = scmp.lt.u32.totalorder %s289_s30, %s428_s1 }
  0x17   :  { %p295_p10 = pnand %p293_p9, %p290_p8 }
  0x19   :  { %298 = shalt.err (!%p295_p10)
}
  0x1a   :  { %s299_s8 = scalar_lea.vmem %s29_s27, 1024  ;;  %p304_p12 = scmp.lt.s32.totalorder %s29_s27, %s29_s27 }
  0x1b   :  { %p300_p11 = scmp.ne.s32.totalorder %s29_s27, %s299_s8  ;;  %p305_p13 = scmp.lt.s32.totalorder %s299_s8, %s299_s8 }
  0x1d   :  { %p306_p0 = por %p305_p13, %p304_p12 }
  0x1f   :  { %p307_p1 = pnand %p306_p0, %p300_p11 }
  0x21   :  { %310 = shalt.err (!%p307_p1)
}
  0x22   :  { %s343_s0 = smov 64   ;;  %s344_s9 = smov 4  }
  0x23   :  { %34 = dma.hbm_to_vmem [thread:$0]  %s428_s1, 1024, %s29_s27, [#allocation6], %s343_s0, %s343_s0, %s344_s9  }
  0x24   :  { %333 = dma.done.wait [#allocation3], 256  }
  0x25   :  { %334 = vsyncadd [#allocation3], 4294967040 }
  0x26   :  { %335 = dma.done.wait [#allocation6], 1024  }
  0x27   :  { %336 = vsyncadd [#allocation6], 4294966272  ;;  %v345_v0 = vmov 0.0   ;;  %v395_v1 = vld [vmem:[#allocation2] sm:$0xff]  ;;  %v397_v2 = vld [vmem:[#allocation2 + $0x8] sm:$0xff]  ;;  %vm346_vm0 = vmmov 0  }
  0x28   :  { %226 = vmatprep.subr.bf16.mxu0 %v345_v0  ;;  %46 = vadd.xlane.f32.xlu0 %v395_v1  ;;  %v53_v3 = vmul.f32 %v395_v1, %v395_v1  ;;  %v255_v4 = vld [vmem:[#allocation5] sm:$0xff]   ;;  %v54_v5 = vmul.f32 %v397_v2, %v397_v2  ;;  %v256_v6 = vld [vmem:[#allocation5 + $0x8] sm:$0xff]   ;;  %v257_v7 = vld [vmem:[#allocation5 + $0x10] sm:$0xff]   ;;  %s347_s13 = smov [#allocation7]  }
  0x29   :  { %227 = vmatpush3.bf16.msra.mxu0 %v255_v4  ;;  %v258_v8 = vld [vmem:[#allocation5 + $0x18] sm:$0xff]   ;;  %v259_v9 = vld [vmem:[#allocation5 + $0x20] sm:$0xff]   ;;  %v260_v10 = vld [vmem:[#allocation5 + $0x28] sm:$0xff]   ;;  %242 = vmatprep.mubr.msk.bf16.mxu0 %vm346_vm0, %v345_v0  ;;  %s195_s14 = sshll.u32 %s347_s13, 4  ;;  %s196_s14 = int_to_ptr.vmem [resolvable:$true] %s195_s14 }
  0x2a   :  { %55 = vadd.xlane.f32.xlu1 %v53_v3  ;;  %228 = vmatprep.subr.bf16.mxu0 %v345_v0  ;;  %v261_v11 = vld [vmem:[#allocation5 + $0x30] sm:$0xff]   ;;  %v262_v12 = vld [vmem:[#allocation5 + $0x38] sm:$0xff]   ;;  %s311_s15 = scalar_lea.vmem %s196_s14, 256  ;;  %p316_p3 = scmp.lt.s32.totalorder %s196_s14, %s196_s14 }
  0x2b   :  { %v208_v34 = vld [vmem:[%s429_s2] ss:$0 sm:$0xff]  ;;  %p312_p2 = scmp.ne.s32.totalorder %s196_s14, %s311_s15  ;;  %p317_p4 = scmp.lt.s32.totalorder %s311_s15, %s311_s15 }
  0x2c   :  { %48 = vadd.xlane.f32.xlu0 %v397_v2 }
  0x2d   :  { %229 = vmatpush3.bf16.msra.mxu0 %v256_v6  ;;  %p318_p5 = por %p317_p4, %p316_p3 }
  0x2e   :  { %57 = vadd.xlane.f32.xlu1 %v54_v5  ;;  %230 = vmatprep.subr.bf16.mxu0 %v345_v0 }
  0x2f   :  { %p319_p6 = pnand %p318_p5, %p312_p2 }
  0x31   :  { %231 = vmatpush3.bf16.msra.mxu0 %v257_v7 }
  0x32   :  { %232 = vmatprep.subr.bf16.mxu0 %v345_v0 }
  0x35   :  { %233 = vmatpush3.bf16.msra.mxu0 %v258_v8 }
  0x36   :  { %234 = vmatprep.subr.bf16.mxu0 %v345_v0 }
  0x39   :  { %235 = vmatpush3.bf16.msra.mxu0 %v259_v9 }
  0x3a   :  { %236 = vmatprep.subr.bf16.mxu0 %v345_v0 }
  0x3d   :  { %237 = vmatpush3.bf16.msra.mxu0 %v260_v10 }
  0x3e   :  { %238 = vmatprep.subr.bf16.mxu0 %v345_v0 }
  0x41   :  { %239 = vmatpush3.bf16.msra.mxu0 %v261_v11 }
  0x42   :  { %240 = vmatprep.subr.bf16.mxu0 %v345_v0 }
  0x45   :  { %241 = vmatpush3.bf16.msra.mxu0 %v262_v12 }
  0xb5   :  { %v47_v13 = vpop.xlane.xlu0 %46 }
  0xb6   :  { %v51_v14 = vmul.f32 0.0078125, %v47_v13 }
  0xb7   :  { %v56_v15 = vpop.xlane.xlu1 %55 }
  0xb8   :  { %v61_v16 = vmul.f32 %v51_v14, %v51_v14  ;;  %v59_v17 = vmul.f32 0.0078125, %v56_v15  ;;  %v65_v28 = vsub.f32 %v395_v1, %v51_v14 }
  0xb9   :  { %v49_v18 = vpop.xlane.xlu0 %48 }
  0xba   :  { %v63_v19 = vsub.f32 %v59_v17, %v61_v16  ;;  %v52_v20 = vmul.f32 0.0078125, %v49_v18 }
  0xbb   :  { %v58_v21 = vpop.xlane.xlu1 %57 }
  0xbc   :  { %v67_v22 = vadd.f32 1e-05, %v63_v19  ;;  %v62_v23 = vmul.f32 %v52_v20, %v52_v20  ;;  %v60_v24 = vmul.f32 0.0078125, %v58_v21  ;;  %v66_v29 = vsub.f32 %v397_v2, %v52_v20 }
  0xbe   :  { %v64_v25 = vsub.f32 %v60_v24, %v62_v23  ;;  %263 = vrsqrt.f32 %v67_v22 }
  0xc0   :  { %v68_v26 = vadd.f32 1e-05, %v64_v25 }
  0xc2   :  { %265 = vrsqrt.f32 %v68_v26 }
  0xc8   :  { %v264_v27 = vpop.eup %263 }
  0xc9   :  { %v71_v31 = vmul.f32 %v264_v27, %v65_v28 }
  0xcc   :  { %v266_v30 = vpop.eup %265 }
  0xcd   :  { %v72_v32 = vmul.f32 %v266_v30, %v66_v29 }
  0xcf   :  { %v73_v33 = vpack.c.bf16 %v72_v32, %v71_v31 }
  0xd1   :  { %243 = vmatmul.mubr.bf16.vlgmr.msra.gmra.mrb[0].mxu0 %v73_v33 }
 0x1a4   :  { %v179_v35 = vpop.f32.mrb[0].mxu0 }
 0x1a5   :  { %v180_v36 = vadd.f32 %v208_v34, %v179_v35  ;;  %v244_v37 = vpop.f32.mrb[1].mxu0 }
 0x1a6   :  { %v182_v38 = vpop.f32.mrb[2].mxu0 }
 0x1a7   :  { %v186_v39 = vadd.f32 %v180_v36, %v395_v1  ;;  %v183_v40 = vadd.f32 %v208_v34, %v182_v38  ;;  %v245_v41 = vpop.f32.mrb[3].mxu0 }
 0x1a9   :  { %188 = vst [vmem:[#allocation7] sm:$0xff] %v186_v39  ;;  %v187_v42 = vadd.f32 %v183_v40, %v397_v2 }
 0x1ab   :  { %189 = vst [vmem:[#allocation7 + $0x8] sm:$0xff] %v187_v42 }
 0x1ac   :  { %322 = shalt.err (!%p319_p6)
}
 0x1ad   :  { %s323_s17 = scalar_lea.hbm %s430_s3, 256 }
 0x1ae   :  { %p324_p7 = scmp.ne.s32.totalorder %s430_s3, %s323_s17  ;;  %p327_p8 = scmp.lt.u32.totalorder %s323_s17, %s430_s3 }
 0x1b0   :  { %p329_p9 = pnand %p327_p8, %p324_p7 }
 0x1b2   :  { %332 = shalt.err (!%p329_p9)
}
 0x1b3   :  { %201 = dma.vmem_to_hbm [thread:$0]  %s196_s14, 256, %s430_s3, [#allocation4], %s340_s22, %s340_s22, %s341_s23  }
 0x1b4   :  { %337 = dma.done.wait [#allocation4], 256  }
 0x1b5   :  { %338 = vsyncadd [#allocation4], 4294967040 }
 0x1b6   :  { %205 = vsyncpa [#allocation3], 1 }
 0x1b7   :  { %206 = vsyncpa [#allocation6], 1 }
 0x1b8   :  { %207 = vsyncpa [#allocation4], 1 }

</bundles_post_ra>
